<compile_context>
chip_gen: v7x
topology: tpu7x:2x2x1
jax: 0.10.0
libtpu: 0.0.40
codegen_flags: <defaults>
</compile_context>

<pallas_src>
import math

import jax
import jax.numpy as jnp
from jax.experimental import pallas as pl
from jax.experimental.pallas import tpu as pltpu

# ------------------------- model hyper-parameters --------------------------
STATE_DIM = (6, 8)        # PyTorch `inputs` is (B, 6, S) with S = state_dim[1]
ACTION_DIM = 6
N_CONV = 32               # vectorOutDim
N_FC = 32                 # scalarOutDim
N_FC1 = 32                # numFcOutput
BATCH = 2

S = STATE_DIM[1]
LS = S - 4 + 1            # conv output length over the time axis
LA = ACTION_DIM - 4 + 1   # conv output length over the bitrate axis
NUM_FC_INPUT = 2 * N_CONV * LS + 3 * N_FC + N_CONV * LA   # 512 at these sizes


# ------------------------------ Pallas kernel ------------------------------
def actor_kernel(x_ref, wpre_ref, wfc_ref, wout_ref, b_ref, o_ref):
    f32 = jnp.float32

    x = x_ref[...]                              # (BB, 6*S)
    b_pre = b_ref[0:1, :]                       # (1, numFcInput)
    b_fc = b_ref[1:2, :N_FC1]                   # (1, n_fc1)
    b_out = b_ref[2:3, :ACTION_DIM]             # (1, action_dim)

    # All branch layers (3 scalar FCs + 3 convs) + ReLU as ONE matmul.
    a = jnp.dot(x, wpre_ref[...], preferred_element_type=f32) + b_pre
    a = jnp.maximum(a, 0.0)                     # == fullyConnectedInput

    # fullyConnected + ReLU
    h = jnp.dot(a, wfc_ref[...], preferred_element_type=f32) + b_fc
    h = jnp.maximum(h, 0.0)

    # outputLayer + softmax
    logits = jnp.dot(h, wout_ref[...], preferred_element_type=f32) + b_out
    m = jnp.max(logits, axis=-1, keepdims=True)
    e = jnp.exp(logits - m)
    denom = jnp.sum(e, axis=-1, keepdims=True)
    o_ref[...] = (e * pl.reciprocal(denom, approx=False)).astype(o_ref.dtype)


# ----------------------------- parameter init ------------------------------
def init_params(key):
    ks = jax.random.split(key, 8)

    def xavier_uniform(k, shape, fan_in, fan_out):
        a = math.sqrt(6.0 / (fan_in + fan_out))
        return jax.random.uniform(k, shape, jnp.float32, -a, a)

    def xavier_normal(k, shape, fan_in, fan_out):
        std = math.sqrt(2.0 / (fan_in + fan_out))
        return std * jax.random.normal(k, shape, jnp.float32)

    p = {}
    # Conv1d(1, N_CONV, 4): weight (C, 1, 4), bias (C,)
    p['tW'] = xavier_uniform(ks[0], (N_CONV, 1, 4), 4, 4 * N_CONV)
    p['dW'] = xavier_uniform(ks[1], (N_CONV, 1, 4), 4, 4 * N_CONV)
    p['cW'] = xavier_normal(ks[2], (N_CONV, 1, 4), 4, 4 * N_CONV)
    p['tB'] = jnp.zeros((N_CONV,), jnp.float32)
    p['dB'] = jnp.zeros((N_CONV,), jnp.float32)
    p['cB'] = jnp.zeros((N_CONV,), jnp.float32)
    # Linear(1, N_FC): weight (n_fc, 1), bias (n_fc,)
    p['brW'] = xavier_uniform(ks[3], (N_FC, 1), 1, N_FC)
    p['bufW'] = xavier_uniform(ks[4], (N_FC, 1), 1, N_FC)
    p['leftW'] = xavier_uniform(ks[5], (N_FC, 1), 1, N_FC)
    p['brB'] = jnp.zeros((N_FC,), jnp.float32)
    p['bufB'] = jnp.zeros((N_FC,), jnp.float32)
    p['leftB'] = jnp.zeros((N_FC,), jnp.float32)
    # fullyConnected / outputLayer
    p['fcW'] = xavier_uniform(ks[6], (N_FC1, NUM_FC_INPUT), NUM_FC_INPUT, N_FC1)
    p['fcB'] = jnp.zeros((N_FC1,), jnp.float32)
    p['outW'] = xavier_uniform(ks[7], (ACTION_DIM, N_FC1), N_FC1, ACTION_DIM)
    p['outB'] = jnp.zeros((ACTION_DIM,), jnp.float32)
    return p


# ------------------------- weight packing (glue) ----------------------------
def _conv_unrolled(convW, L, s_in):
    """Conv1d(1,C,4) weight (C,1,4) -> unrolled (s_in, C*L), col index c*L + l.

    out[b, c*L + l] = sum_k x[b, l+k] * convW[c, 0, k]
    """
    C, _, K = convW.shape
    w = convW[:, 0, :]                       # (C, K)
    blk = jnp.zeros((s_in, C, L), jnp.float32)
    for l in range(L):
        blk = blk.at[l:l + K, :, l].set(w.T)  # (K, C)
    return blk.reshape(s_in, C * L)


def pack_params(p):
    """Pack all layer weights into 3 matmul slabs + 1 bias slab."""
    Wp = jnp.zeros((6 * S, NUM_FC_INPUT), jnp.float32)
    bp = jnp.zeros((NUM_FC_INPUT,), jnp.float32)
    off = 0
    # torch.cat order: [bitrate, buffer, t_flat, d_flat, c_flat, leftChunk]
    # bitrate: uses x[:, 0, -1]  -> row 0*S + (S-1)
    Wp = Wp.at[0 * S + S - 1, off:off + N_FC].set(p['brW'][:, 0])
    bp = bp.at[off:off + N_FC].set(p['brB']); off += N_FC
    # buffer: uses x[:, 1, -1]
    Wp = Wp.at[1 * S + S - 1, off:off + N_FC].set(p['bufW'][:, 0])
    bp = bp.at[off:off + N_FC].set(p['bufB']); off += N_FC
    # t conv: channel 2, full length S, flatten index c*LS + l
    Wp = Wp.at[2 * S:3 * S, off:off + N_CONV * LS].set(
        _conv_unrolled(p['tW'], LS, S))
    bp = bp.at[off:off + N_CONV * LS].set(jnp.repeat(p['tB'], LS))
    off += N_CONV * LS
    # d conv: channel 3
    Wp = Wp.at[3 * S:4 * S, off:off + N_CONV * LS].set(
        _conv_unrolled(p['dW'], LS, S))
    bp = bp.at[off:off + N_CONV * LS].set(jnp.repeat(p['dB'], LS))
    off += N_CONV * LS
    # c conv: channel 4, only first ACTION_DIM positions are used
    Wp = Wp.at[4 * S:4 * S + ACTION_DIM, off:off + N_CONV * LA].set(
        _conv_unrolled(p['cW'], LA, ACTION_DIM))
    bp = bp.at[off:off + N_CONV * LA].set(jnp.repeat(p['cB'], LA))
    off += N_CONV * LA
    # leftChunk: uses x[:, 5, -1]
    Wp = Wp.at[5 * S + S - 1, off:off + N_FC].set(p['leftW'][:, 0])
    bp = bp.at[off:off + N_FC].set(p['leftB']); off += N_FC
    assert off == NUM_FC_INPUT

    W_fc = p['fcW'].T          # (numFcInput, n_fc1) — no permutation needed
    W_out = p['outW'].T        # (n_fc1, action_dim)

    biases = jnp.zeros((3, NUM_FC_INPUT), jnp.float32)
    biases = biases.at[0, :].set(bp)
    biases = biases.at[1, :N_FC1].set(p['fcB'])
    biases = biases.at[2, :ACTION_DIM].set(p['outB'])
    return Wp, W_fc, W_out, biases


# ------------------------------ Pallas wrapper -----------------------------
def actor_forward_pallas(x, p, *, batch_block=128):
    B = x.shape[0]
    x_flat = x.reshape(B, 6 * S).astype(jnp.float32)   # row index = ch*S + s

    W_pre, W_fc, W_out, biases = pack_params(p)

    # Batch tiling: block of at least 8 rows (f32 sublane), up to batch_block.
    BB = min(batch_block, ((B + 7) // 8) * 8)
    B_pad = ((B + BB - 1) // BB) * BB
    if B_pad != B:
        x_flat = jnp.pad(x_flat, ((0, B_pad - B), (0, 0)))
    grid = (B_pad // BB,)

    out = pl.pallas_call(
        actor_kernel,
        out_shape=jax.ShapeDtypeStruct((B_pad, ACTION_DIM), jnp.float32),
        grid=grid,
        in_specs=[
            pl.BlockSpec((BB, 6 * S), lambda i: (i, 0)),        # batch-tiled x
            pl.BlockSpec(W_pre.shape, lambda i: (0, 0)),        # resident weights
            pl.BlockSpec(W_fc.shape, lambda i: (0, 0)),
            pl.BlockSpec(W_out.shape, lambda i: (0, 0)),
            pl.BlockSpec(biases.shape, lambda i: (0, 0)),
        ],
        out_specs=pl.BlockSpec((BB, ACTION_DIM), lambda i: (i, 0)),
        compiler_params=pltpu.CompilerParams(
            dimension_semantics=("parallel",)),
    )(x_flat, W_pre, W_fc, W_out, biases)
    return out[:B]


# ------------------------- pure-JAX reference model ------------------------
def actor_forward_ref(x, p):
    relu = jax.nn.relu

    def lin1(v, W, bias):             # Linear(1, n)
        return relu(v @ W.T + bias)

    def conv1d(v, W, bias):           # Conv1d(1, C, 4): v (B, S) -> (B, C, L)
        L = v.shape[1] - 3
        cols = [v[:, l:l + 4] @ W[:, 0, :].T + bias for l in range(L)]
        return relu(jnp.stack(cols, axis=-1))

    br = lin1(x[:, 0:1, -1], p['brW'], p['brB'])
    buf = lin1(x[:, 1:2, -1], p['bufW'], p['bufB'])
    left = lin1(x[:, 5:6, -1], p['leftW'], p['leftB'])
    t = conv1d(x[:, 2, :], p['tW'], p['tB'])
    d = conv1d(x[:, 3, :], p['dW'], p['dB'])
    c = conv1d(x[:, 4, :ACTION_DIM], p['cW'], p['cB'])

    b = x.shape[0]
    cat = jnp.concatenate(
        [br, buf, t.reshape(b, -1), d.reshape(b, -1), c.reshape(b, -1), left],
        axis=1)
    h = relu(cat @ p['fcW'].T + p['fcB'])
    return jax.nn.softmax(h @ p['outW'].T + p['outB'], axis=-1)


# ----------------------------------- main -----------------------------------
if __name__ == "__main__":
    key = jax.random.PRNGKey(0)
    k_x, k_x2, k_p = jax.random.split(key, 3)
    params = init_params(k_p)

    # Small batch (matches the module spec's typical usage).
    x = jax.random.normal(k_x, (BATCH, STATE_DIM[0], S), dtype=jnp.float32)
    out = jax.block_until_ready(actor_forward_pallas(x, params))
    ref = actor_forward_ref(x, params)
    assert out.shape == (BATCH, ACTION_DIM)
    assert jnp.allclose(jnp.sum(out, axis=-1), 1.0, atol=1e-5)
    assert jnp.allclose(out, ref, rtol=1e-4, atol=1e-5), (out, ref)

    # Larger batch: exercises the parallel batch grid (multiple blocks).
    xb = jax.random.normal(k_x2, (256, STATE_DIM[0], S), dtype=jnp.float32)
    outb = jax.block_until_ready(actor_forward_pallas(xb, params))
    refb = actor_forward_ref(xb, params)
    assert outb.shape == (256, ACTION_DIM)
    assert jnp.allclose(jnp.sum(outb, axis=-1), 1.0, atol=1e-5)
    assert jnp.allclose(outb, refb, rtol=1e-4, atol=1e-5)

    print("KERNEL_OK")
</pallas_src>

<mosaic_0001>
module attributes {stable_mosaic.version = 11 : i64} {
  func.func @actor_kernel(%arg0: i32, %arg1: memref<8x48xf32, #tpu.memory_space<vmem>>, %arg2: memref<48x512xf32, #tpu.memory_space<vmem>>, %arg3: memref<512x32xf32, #tpu.memory_space<vmem>>, %arg4: memref<32x6xf32, #tpu.memory_space<vmem>>, %arg5: memref<3x512xf32, #tpu.memory_space<vmem>>, %arg6: memref<8x6xf32, #tpu.memory_space<vmem>>) attributes {dimension_semantics = [#tpu.dimension_semantics<parallel>], iteration_bounds = array<i64: 1>, scalar_prefetch = 0 : i64, scratch_operands = 0 : i64, tpu.core_type = #tpu.core_type<tc>, window_params = [{transform_indices = @transform_0, window_bounds = array<i64: 8, 48>}, {pipeline_mode = #tpu.pipeline_mode<synchronous>, transform_indices = @transform_1, window_bounds = array<i64: 48, 512>}, {pipeline_mode = #tpu.pipeline_mode<synchronous>, transform_indices = @transform_2, window_bounds = array<i64: 512, 32>}, {pipeline_mode = #tpu.pipeline_mode<synchronous>, transform_indices = @transform_3, window_bounds = array<i64: 32, 6>}, {pipeline_mode = #tpu.pipeline_mode<synchronous>, transform_indices = @transform_4, window_bounds = array<i64: 3, 512>}, {transform_indices = @transform_5, window_bounds = array<i64: 8, 6>}]} {
    %c0 = arith.constant 0 : index
    %c0_0 = arith.constant 0 : index
    %0 = vector.load %arg1[%c0, %c0_0] : memref<8x48xf32, #tpu.memory_space<vmem>>, vector<8x48xf32>
    %c0_1 = arith.constant 0 : index
    %c0_2 = arith.constant 0 : index
    %1 = vector.load %arg5[%c0_1, %c0_2] : memref<3x512xf32, #tpu.memory_space<vmem>>, vector<1x512xf32>
    %c1 = arith.constant 1 : index
    %c0_3 = arith.constant 0 : index
    %2 = vector.load %arg5[%c1, %c0_3] : memref<3x512xf32, #tpu.memory_space<vmem>>, vector<1x32xf32>
    %c2 = arith.constant 2 : index
    %c0_4 = arith.constant 0 : index
    %3 = vector.load %arg5[%c2, %c0_4] : memref<3x512xf32, #tpu.memory_space<vmem>>, vector<1x6xf32>
    %c0_5 = arith.constant 0 : index
    %c0_6 = arith.constant 0 : index
    %4 = vector.load %arg2[%c0_5, %c0_6] : memref<48x512xf32, #tpu.memory_space<vmem>>, vector<48x512xf32>
    %cst = arith.constant dense<0.000000e+00> : vector<8x512xf32>
    %5 = tpu.matmul %0, %4, %cst {dimension_numbers = #tpu.dot_dimension_numbers<[1], [0], [0], [1], [0, 0, 1, 1], [], []>} : vector<8x48xf32>, vector<48x512xf32>, vector<8x512xf32> -> vector<8x512xf32>
    %6 = vector.broadcast %1 : vector<1x512xf32> to vector<8x512xf32>
    %7 = arith.addf %5, %6 : vector<8x512xf32>
    %cst_7 = arith.constant 0.000000e+00 : f32
    %8 = vector.broadcast %cst_7 : f32 to vector<8x512xf32>
    %9 = arith.maximumf %7, %8 : vector<8x512xf32>
    %c0_8 = arith.constant 0 : index
    %c0_9 = arith.constant 0 : index
    %10 = vector.load %arg3[%c0_8, %c0_9] : memref<512x32xf32, #tpu.memory_space<vmem>>, vector<512x32xf32>
    %cst_10 = arith.constant dense<0.000000e+00> : vector<8x32xf32>
    %11 = tpu.matmul %9, %10, %cst_10 {dimension_numbers = #tpu.dot_dimension_numbers<[1], [0], [0], [1], [0, 0, 1, 1], [], []>} : vector<8x512xf32>, vector<512x32xf32>, vector<8x32xf32> -> vector<8x32xf32>
    %12 = vector.broadcast %2 : vector<1x32xf32> to vector<8x32xf32>
    %13 = arith.addf %11, %12 : vector<8x32xf32>
    %cst_11 = arith.constant 0.000000e+00 : f32
    %14 = vector.broadcast %cst_11 : f32 to vector<8x32xf32>
    %15 = arith.maximumf %13, %14 : vector<8x32xf32>
    %c0_12 = arith.constant 0 : index
    %c0_13 = arith.constant 0 : index
    %16 = vector.load %arg4[%c0_12, %c0_13] : memref<32x6xf32, #tpu.memory_space<vmem>>, vector<32x6xf32>
    %cst_14 = arith.constant dense<0.000000e+00> : vector<8x6xf32>
    %17 = tpu.matmul %15, %16, %cst_14 {dimension_numbers = #tpu.dot_dimension_numbers<[1], [0], [0], [1], [0, 0, 1, 1], [], []>} : vector<8x32xf32>, vector<32x6xf32>, vector<8x6xf32> -> vector<8x6xf32>
    %18 = vector.broadcast %3 : vector<1x6xf32> to vector<8x6xf32>
    %19 = arith.addf %17, %18 : vector<8x6xf32>
    %cst_15 = arith.constant dense<0xFF800000> : vector<8xf32>
    %20 = vector.multi_reduction <maximumf>, %19, %cst_15 [1] : vector<8x6xf32> to vector<8xf32>
    %21 = vector.shape_cast %20 : vector<8xf32> to vector<8x1xf32>
    %22 = vector.broadcast %21 : vector<8x1xf32> to vector<8x6xf32>
    %23 = arith.subf %19, %22 : vector<8x6xf32>
    %24 = math.exp %23 : vector<8x6xf32>
    %cst_16 = arith.constant dense<0.000000e+00> : vector<8xf32>
    %25 = vector.multi_reduction <add>, %24, %cst_16 [1] : vector<8x6xf32> to vector<8xf32>
    %26 = vector.shape_cast %25 : vector<8xf32> to vector<8x1xf32>
    %27 = tpu.reciprocal %26 : vector<8x1xf32> -> vector<8x1xf32>
    %28 = vector.broadcast %27 : vector<8x1xf32> to vector<8x6xf32>
    %29 = arith.mulf %24, %28 : vector<8x6xf32>
    %c0_17 = arith.constant 0 : index
    %c0_18 = arith.constant 0 : index
    %30 = vector.load %arg6[%c0_17, %c0_18] : memref<8x6xf32, #tpu.memory_space<vmem>>, vector<8x6xf32>
    tpu.vector_store %arg6[%c0_17, %c0_18], %29 {strides = array<i32>} : memref<8x6xf32, #tpu.memory_space<vmem>>, vector<8x6xf32>,
    return
  }
  func.func @transform_0(%arg0: i32) -> (i32, i32) {
    %c0_i32 = arith.constant 0 : i32
    %c0_i32_0 = arith.constant 0 : i32
    return %arg0, %c0_i32 : i32, i32
  }
  func.func @transform_1(%arg0: i32) -> (i32, i32) {
    %c0_i32 = arith.constant 0 : i32
    %c0_i32_0 = arith.constant 0 : i32
    %c0_i32_1 = arith.constant 0 : i32
    return %c0_i32, %c0_i32_0 : i32, i32
  }
  func.func @transform_2(%arg0: i32) -> (i32, i32) {
    %c0_i32 = arith.constant 0 : i32
    %c0_i32_0 = arith.constant 0 : i32
    %c0_i32_1 = arith.constant 0 : i32
    return %c0_i32, %c0_i32_0 : i32, i32
  }
  func.func @transform_3(%arg0: i32) -> (i32, i32) {
    %c0_i32 = arith.constant 0 : i32
    %c0_i32_0 = arith.constant 0 : i32
    %c0_i32_1 = arith.constant 0 : i32
    return %c0_i32, %c0_i32_0 : i32, i32
  }
  func.func @transform_4(%arg0: i32) -> (i32, i32) {
    %c0_i32 = arith.constant 0 : i32
    %c0_i32_0 = arith.constant 0 : i32
    %c0_i32_1 = arith.constant 0 : i32
    return %c0_i32, %c0_i32_0 : i32, i32
  }
  func.func @transform_5(%arg0: i32) -> (i32, i32) {
    %c0_i32 = arith.constant 0 : i32
    %c0_i32_0 = arith.constant 0 : i32
    return %arg0, %c0_i32 : i32, i32
  }
}

</mosaic_0001>

<bundles_post_ra>
// kernel: tpu_custom_call.1
= control target key start
LH: loop header
LB: loop body
LE: loop exit
PB: predicated region body
PF: predicated region fallthrough
CT: control target
= control target key end

     0   :  { %v755_v7 = vmov 0.0   ;;  %vm70_vm0 = vcmask 392192   ;;  %s1097_s0 = inlined_call_operand.vmem [shape: f32[8,48], index: 0, kind: input, shape index: {}]   ;;  %s1098_s1 = inlined_call_operand.vmem [shape: f32[48,512], index: 1, kind: input, shape index: {}]   ;;  %s1099_s2 = inlined_call_operand.vmem [shape: f32[512,32], index: 2, kind: input, shape index: {}]   ;;  %s1100_s3 = inlined_call_operand.vmem [shape: f32[32,6], index: 3, kind: input, shape index: {}]   ;;  %s1101_s4 = inlined_call_operand.vmem [shape: f32[3,512], index: 4, kind: input, shape index: {}]   ;;  %s1102_s5 = inlined_call_operand.hbm [shape: f32[8,6], index: 5, kind: output, shape index: {}]  }
   0x1   :  { %v26_v0 = vld [vmem:[%s1098_s1 + $0x8] sm:$0xff]  ;;  %v28_v2 = vld [vmem:[%s1098_s1 + $0x18] sm:$0xff]  ;;  %v25_v5 = vld [vmem:[%s1098_s1] sm:$0xff]  ;;  %138 = vmatprep.mubr.f32.mxu0 %v755_v7  ;;  %209 = vmatprep.mubr.f32.mxu1 %v755_v7 }
   0x2   :  { %v30_v1 = vld [vmem:[%s1098_s1 + $0x28] sm:$0xff]  ;;  %v32_v4 = vld [vmem:[%s1098_s1 + $0x38] sm:$0xff]  ;;  %v29_v6 = vld [vmem:[%s1098_s1 + $0x20] sm:$0xff] }
   0x3   :  { %v629_v3 = vpack.c.bf16 %v30_v1, %v26_v0  ;;  %v641_v8 = vpack.c.bf16 %v32_v4, %v28_v2  ;;  %v631_v9 = vpack.c.bf16 %v29_v6, %v25_v5  ;;  %v27_v10 = vld [vmem:[%s1098_s1 + $0x10] sm:$0xff]  ;;  %v34_v12 = vld [vmem:[%s1098_s1 + $0x48] sm:$0xff]  ;;  %v36_v15 = vld [vmem:[%s1098_s1 + $0x58] sm:$0xff] }
   0x4   :  { %v31_v11 = vld [vmem:[%s1098_s1 + $0x30] sm:$0xff]  ;;  %v38_v14 = vld [vmem:[%s1098_s1 + $0x68] sm:$0xff]  ;;  %v40_v16 = vld [vmem:[%s1098_s1 + $0x78] sm:$0xff] }
   0x5   :  { %630 = vmatprep.subr.bf16.mxu0 %v629_v3  ;;  %v643_v13 = vpack.c.bf16 %v31_v11, %v27_v10  ;;  %642 = vmatprep.subr.bf16.mxu1 %v641_v8  ;;  %v633_v17 = vpack.c.bf16 %v38_v14, %v34_v12  ;;  %v645_v18 = vpack.c.bf16 %v40_v16, %v36_v15  ;;  %v33_v19 = vld [vmem:[%s1098_s1 + $0x40] sm:$0xff]  ;;  %v35_v21 = vld [vmem:[%s1098_s1 + $0x50] sm:$0xff]  ;;  %v42_v24 = vld [vmem:[%s1098_s1 + $0x88] sm:$0xff] }
   0x6   :  { %632 = vmatpush1.bf16.msra.mxu0 %v631_v9  ;;  %v37_v20 = vld [vmem:[%s1098_s1 + $0x60] sm:$0xff]  ;;  %v39_v23 = vld [vmem:[%s1098_s1 + $0x70] sm:$0xff]  ;;  %v46_v25 = vld [vmem:[%s1098_s1 + $0xa8] sm:$0xff] }
   0x7   :  { %644 = vmatpush1.bf16.msra.mxu1 %v643_v13  ;;  %v635_v22 = vpack.c.bf16 %v37_v20, %v33_v19  ;;  %634 = vmatprep.subr.bf16.mxu0 %v633_v17  ;;  %v647_v26 = vpack.c.bf16 %v39_v23, %v35_v21  ;;  %v637_v27 = vpack.c.bf16 %v46_v25, %v42_v24  ;;  %v44_v28 = vld [vmem:[%s1098_s1 + $0x98] sm:$0xff]  ;;  %v41_v30 = vld [vmem:[%s1098_s1 + $0x80] sm:$0xff]  ;;  %v43_v33 = vld [vmem:[%s1098_s1 + $0x90] sm:$0xff] }
   0x8   :  { %646 = vmatprep.subr.bf16.mxu1 %v645_v18  ;;  %v48_v29 = vld [vmem:[%s1098_s1 + $0xb8] sm:$0xff]  ;;  %v45_v32 = vld [vmem:[%s1098_s1 + $0xa0] sm:$0xff]  ;;  %v47_v34 = vld [vmem:[%s1098_s1 + $0xb0] sm:$0xff] }
   0x9   :  { %v649_v31 = vpack.c.bf16 %v48_v29, %v44_v28  ;;  %v639_v35 = vpack.c.bf16 %v45_v32, %v41_v30  ;;  %v236_v36 = vld [vmem:[%s1099_s2 + $0x80] sm:$0xff]  ;;  %v237_v37 = vld [vmem:[%s1099_s2 + $0x88] sm:$0xff]  ;;  %v651_v38 = vpack.c.bf16 %v47_v34, %v43_v33  ;;  %v238_v47 = vld [vmem:[%s1099_s2 + $0x90] sm:$0xff] }
   0xa   :  { %636 = vmatpush1.bf16.msra.mxu0 %v635_v22  ;;  %v653_v39 = vpack.c.bf16 %v237_v37, %v236_v36  ;;  %v268_v40 = vld [vmem:[%s1099_s2 + $0x180] sm:$0xff]  ;;  %v269_v41 = vld [vmem:[%s1099_s2 + $0x188] sm:$0xff]  ;;  %v239_v48 = vld [vmem:[%s1099_s2 + $0x98] sm:$0xff] }
   0xb   :  { %648 = vmatpush1.bf16.msra.mxu1 %v647_v26  ;;  %638 = vmatprep.subr.bf16.mxu0 %v637_v27  ;;  %v220_v42 = vld [vmem:[%s1099_s2] sm:$0xff]  ;;  %v685_v43 = vpack.c.bf16 %v269_v41, %v268_v40  ;;  %v221_v44 = vld [vmem:[%s1099_s2 + $0x8] sm:$0xff]  ;;  %v270_v49 = vld [vmem:[%s1099_s2 + $0x190] sm:$0xff]  ;;  %v657_v54 = vpack.c.bf16 %v239_v48, %v238_v47 }
   0xc   :  { %650 = vmatprep.subr.bf16.mxu1 %v649_v31  ;;  %v252_v45 = vld [vmem:[%s1099_s2 + $0x100] sm:$0xff]  ;;  %v253_v46 = vld [vmem:[%s1099_s2 + $0x108] sm:$0xff]  ;;  %v655_v51 = vpack.c.bf16 %v221_v44, %v220_v42  ;;  %v271_v52 = vld [vmem:[%s1099_s2 + $0x198] sm:$0xff] }
   0xd   :  { %v21_v50 = vld [vmem:[%s1097_s0] sm:$0xff]  ;;  %v687_v53 = vpack.c.bf16 %v253_v46, %v252_v45  ;;  %v222_v55 = vld [vmem:[%s1099_s2 + $0x10] sm:$0xff]  ;;  %v223_v56 = vld [vmem:[%s1099_s2 + $0x18] sm:$0xff]  ;;  %v689_v58 = vpack.c.bf16 %v271_v52, %v270_v49 }
   0xe   :  { %640 = vmatpush1.bf16.msra.mxu0 %v639_v35  ;;  %v254_v57 = vld [vmem:[%s1099_s2 + $0x110] sm:$0xff]  ;;  %v255_v59 = vld [vmem:[%s1099_s2 + $0x118] sm:$0xff]  ;;  %v240_v60 = vld [vmem:[%s1099_s2 + $0xa0] sm:$0xff]  ;;  %v659_v0 = vpack.c.bf16 %v223_v56, %v222_v55 }
   0xf   :  { %652 = vmatpush1.bf16.msra.mxu1 %v651_v38  ;;  %654 = vmatprep.subr.bf16.mxu0 %v653_v39  ;;  %v241_v61 = vld [vmem:[%s1099_s2 + $0xa8] sm:$0xff]  ;;  %v272_v62 = vld [vmem:[%s1099_s2 + $0x1a0] sm:$0xff]  ;;  %v691_v1 = vpack.c.bf16 %v255_v59, %v254_v57  ;;  %v242_v9 = vld [vmem:[%s1099_s2 + $0xb0] sm:$0xff] }
  0x10   :  { %686 = vmatprep.subr.bf16.mxu1 %v685_v43  ;;  %v273_v63 = vld [vmem:[%s1099_s2 + $0x1a8] sm:$0xff]  ;;  %v661_v2 = vpack.c.bf16 %v241_v61, %v240_v60  ;;  %v224_v3 = vld [vmem:[%s1099_s2 + $0x20] sm:$0xff]  ;;  %v243_v10 = vld [vmem:[%s1099_s2 + $0xb8] sm:$0xff] }
  0x11   :  { %538 = vmatmul.mubr.msk.f32.vlgmr.msra.gmra.mrb[0].mxu0 %vm70_vm0, %v21_v50  ;;  %v225_v4 = vld [vmem:[%s1099_s2 + $0x28] sm:$0xff]  ;;  %v256_v5 = vld [vmem:[%s1099_s2 + $0x120] sm:$0xff]  ;;  %v693_v6 = vpack.c.bf16 %v273_v63, %v272_v62  ;;  %v274_v11 = vld [vmem:[%s1099_s2 + $0x1b0] sm:$0xff]  ;;  %v665_v15 = vpack.c.bf16 %v243_v10, %v242_v9 }
  0x12   :  { %539 = vmatmul.mubr.msk.f32.vlgmr.msra.gmra.mrb[0].mxu1 %vm70_vm0, %v21_v50  ;;  %656 = vmatpush3.bf16.msra.mxu0 %v655_v51  ;;  %v257_v8 = vld [vmem:[%s1099_s2 + $0x128] sm:$0xff]  ;;  %v275_v12 = vld [vmem:[%s1099_s2 + $0x1b8] sm:$0xff]  ;;  %v663_v13 = vpack.c.bf16 %v225_v4, %v224_v3  ;;  %v226_v16 = vld [vmem:[%s1099_s2 + $0x30] sm:$0xff] }
  0x13   :  { %688 = vmatpush3.bf16.msra.mxu1 %v687_v53  ;;  %658 = vmatprep.subr.bf16.mxu0 %v657_v54  ;;  %v695_v14 = vpack.c.bf16 %v257_v8, %v256_v5  ;;  %v227_v17 = vld [vmem:[%s1099_s2 + $0x38] sm:$0xff]  ;;  %v258_v18 = vld [vmem:[%s1099_s2 + $0x130] sm:$0xff]  ;;  %v697_v19 = vpack.c.bf16 %v275_v12, %v274_v11  ;;  %v244_v21 = vld [vmem:[%s1099_s2 + $0xc0] sm:$0xff] }
  0x14   :  { %690 = vmatprep.subr.bf16.mxu1 %v689_v58  ;;  %v259_v20 = vld [vmem:[%s1099_s2 + $0x138] sm:$0xff]  ;;  %v245_v22 = vld [vmem:[%s1099_s2 + $0xc8] sm:$0xff]  ;;  %v276_v23 = vld [vmem:[%s1099_s2 + $0x1c0] sm:$0xff]  ;;  %v667_v25 = vpack.c.bf16 %v227_v17, %v226_v16 }
  0x15   :  { %v277_v24 = vld [vmem:[%s1099_s2 + $0x1c8] sm:$0xff]  ;;  %v228_v26 = vld [vmem:[%s1099_s2 + $0x40] sm:$0xff]  ;;  %v699_v27 = vpack.c.bf16 %v259_v20, %v258_v18  ;;  %v669_v28 = vpack.c.bf16 %v245_v22, %v244_v21  ;;  %v246_v33 = vld [vmem:[%s1099_s2 + $0xd0] sm:$0xff] }
  0x16   :  { %660 = vmatpush3.bf16.msra.mxu0 %v659_v0  ;;  %v229_v29 = vld [vmem:[%s1099_s2 + $0x48] sm:$0xff]  ;;  %v260_v30 = vld [vmem:[%s1099_s2 + $0x140] sm:$0xff]  ;;  %v701_v32 = vpack.c.bf16 %v277_v24, %v276_v23  ;;  %v247_v34 = vld [vmem:[%s1099_s2 + $0xd8] sm:$0xff] }
  0x17   :  { %692 = vmatpush3.bf16.msra.mxu1 %v691_v1  ;;  %662 = vmatprep.subr.bf16.mxu0 %v661_v2  ;;  %v261_v31 = vld [vmem:[%s1099_s2 + $0x148] sm:$0xff] }
  0x18   :  { %694 = vmatprep.subr.bf16.mxu1 %v693_v6 }
  0x1a   :  { %664 = vmatpush3.bf16.msra.mxu0 %v663_v13 }
  0x1b   :  { %696 = vmatpush3.bf16.msra.mxu1 %v695_v14  ;;  %666 = vmatprep.subr.bf16.mxu0 %v665_v15 }
  0x1c   :  { %698 = vmatprep.subr.bf16.mxu1 %v697_v19 }
  0x1d   :  { %10 = vsyncpa [#allocation3], 0  ;;  %v278_v35 = vld [vmem:[%s1099_s2 + $0x1d0] sm:$0xff]  ;;  %v279_v36 = vld [vmem:[%s1099_s2 + $0x1d8] sm:$0xff]  ;;  %v671_v37 = vpack.c.bf16 %v229_v29, %v228_v26  ;;  %v703_v38 = vpack.c.bf16 %v261_v31, %v260_v30  ;;  %v673_v39 = vpack.c.bf16 %v247_v34, %v246_v33  ;;  %v50_v8 = vlaneseq  ;;  %s758_s1 = smov [#allocation2]  }
  0x1e   :  { %668 = vmatpush3.bf16.msra.mxu0 %v667_v25  ;;  %v230_v40 = vld [vmem:[%s1099_s2 + $0x50] sm:$0xff]  ;;  %v231_v41 = vld [vmem:[%s1099_s2 + $0x58] sm:$0xff]  ;;  %v705_v43 = vpack.c.bf16 %v279_v36, %v278_v35  ;;  %v248_v45 = vld [vmem:[%s1099_s2 + $0xe0] sm:$0xff]  ;;  %v756_v34 = vmov 0.0|0.0   ;;  %vm757_vm1 = vmmov 0   ;;  %vm437_vm2 = vcmask 261120  }
  0x1f   :  { %700 = vmatpush3.bf16.msra.mxu1 %v699_v27  ;;  %670 = vmatprep.subr.bf16.mxu0 %v669_v28  ;;  %v262_v42 = vld [vmem:[%s1099_s2 + $0x150] sm:$0xff]  ;;  %v263_v44 = vld [vmem:[%s1099_s2 + $0x158] sm:$0xff]  ;;  %v249_v46 = vld [vmem:[%s1099_s2 + $0xe8] sm:$0xff]  ;;  %v675_v49 = vpack.c.bf16 %v231_v41, %v230_v40  ;;  %v51_v9 = vshrl.u32 %v50_v8, 7  ;;  %vm511_vm3 = vcmask 48128   ;;  %s530_s23 = sshll.u32 %s758_s1, 4  ;;  %s531_s23 = int_to_ptr.vmem [resolvable:$true] %s530_s23 }
  0x20   :  { %702 = vmatprep.subr.bf16.mxu1 %v701_v32  ;;  %v280_v47 = vld [vmem:[%s1099_s2 + $0x1e0] sm:$0xff]  ;;  %v281_v48 = vld [vmem:[%s1099_s2 + $0x1e8] sm:$0xff]  ;;  %v707_v50 = vpack.c.bf16 %v263_v44, %v262_v42  ;;  %v677_v51 = vpack.c.bf16 %v249_v46, %v248_v45  ;;  %v250_v59 = vld [vmem:[%s1099_s2 + $0xf0] sm:$0xff]  ;;  %p736_p1 = scmp.lt.s32.totalorder %s531_s23, %s531_s23 }
  0x21   :  { %v709_v52 = vpack.c.bf16 %v281_v48, %v280_v47  ;;  %v232_v53 = vld [vmem:[%s1099_s2 + $0x60] sm:$0xff]  ;;  %v233_v54 = vld [vmem:[%s1099_s2 + $0x68] sm:$0xff]  ;;  %v251_v60 = vld [vmem:[%s1099_s2 + $0xf8] sm:$0xff]  ;;  %v52_v10 = vsub.s32 0, %v51_v9  ;;  %v60_v12 = vsub.s32 2, %v51_v9  ;;  %v56_v13 = vsub.s32 1, %v51_v9 }
  0x22   :  { %672 = vmatpush3.bf16.msra.mxu0 %v671_v37  ;;  %v264_v55 = vld [vmem:[%s1099_s2 + $0x160] sm:$0xff]  ;;  %v679_v56 = vpack.c.bf16 %v233_v54, %v232_v53  ;;  %v265_v57 = vld [vmem:[%s1099_s2 + $0x168] sm:$0xff]  ;;  %v282_v61 = vld [vmem:[%s1099_s2 + $0x1f0] sm:$0xff]  ;;  %v681_v62 = vpack.c.bf16 %v251_v60, %v250_v59  ;;  %v64_v14 = vsub.s32 3, %v51_v9 }
  0x23   :  { %704 = vmatpush3.bf16.msra.mxu1 %v703_v38  ;;  %674 = vmatprep.subr.bf16.mxu0 %v673_v39  ;;  %v711_v58 = vpack.c.bf16 %v265_v57, %v264_v55  ;;  %v283_v63 = vld [vmem:[%s1099_s2 + $0x1f8] sm:$0xff]  ;;  %v234_v0 = vld [vmem:[%s1099_s2 + $0x70] sm:$0xff]  ;;  %v22_v11 = vld [vmem:[%s1101_s4] ss:$4 sm:$0xf] }
  0x24   :  { %706 = vmatprep.subr.bf16.mxu1 %v705_v43  ;;  %v235_v1 = vld [vmem:[%s1099_s2 + $0x78] sm:$0xff]  ;;  %v713_v2 = vpack.c.bf16 %v283_v63, %v282_v61  ;;  %v266_v4 = vld [vmem:[%s1099_s2 + $0x170] sm:$0xff]  ;;  %v53_v15 = vrot.slane %v22_v11, %v52_v10  ;;  %v61_v16 = vrot.slane %v22_v11, %v60_v12  ;;  %v57_v17 = vrot.slane %v22_v11, %v56_v13  ;;  %v429_v31 = vld [vmem:[%s1100_s3] sm:$0xff] }
  0x25   :  { %v683_v3 = vpack.c.bf16 %v235_v1, %v234_v0  ;;  %v267_v5 = vld [vmem:[%s1099_s2 + $0x178] sm:$0xff]  ;;  %v65_v18 = vrot.slane %v22_v11, %v64_v14  ;;  %v430_v32 = vld [vmem:[%s1100_s3 + $0x8] sm:$0xff]  ;;  %v431_v35 = vld [vmem:[%s1100_s3 + $0x10] sm:$0xff] }
  0x26   :  { %676 = vmatpush3.bf16.msra.mxu0 %v675_v49  ;;  %v715_v6 = vpack.c.bf16 %v267_v5, %v266_v4  ;;  %v718_v33 = vpack.c.bf16 %v430_v32, %v429_v31  ;;  %v432_v36 = vld [vmem:[%s1100_s3 + $0x18] sm:$0xff]  ;;  %v540_v40 = vld [vmem:[%s1101_s4 + $0x1] ss:$0 sm:$0xff]  ;;  %v541_v48 = vld [vmem:[%s1101_s4 + $0x2] ss:$0 sm:$0xff]  ;;  %s731_s4 = scalar_lea.vmem %s531_s23, 128 }
  0x27   :  { %708 = vmatpush3.bf16.msra.mxu1 %v707_v50  ;;  %678 = vmatprep.subr.bf16.mxu0 %v677_v51  ;;  %v721_v37 = vpack.c.bf16 %v432_v36, %v431_v35  ;;  %p732_p0 = scmp.ne.s32.totalorder %s531_s23, %s731_s4  ;;  %p737_p2 = scmp.lt.s32.totalorder %s731_s4, %s731_s4 }
  0x28   :  { %710 = vmatprep.subr.bf16.mxu1 %v709_v52 }
  0x29   :  { %p738_p3 = por %p737_p2, %p736_p1 }
  0x2a   :  { %680 = vmatpush3.bf16.msra.mxu0 %v679_v56 }
  0x2b   :  { %712 = vmatpush3.bf16.msra.mxu1 %v711_v58  ;;  %682 = vmatprep.subr.bf16.mxu0 %v681_v62  ;;  %p739_p4 = pnand %p738_p3, %p732_p0 }
  0x2c   :  { %714 = vmatprep.subr.bf16.mxu1 %v713_v2 }
  0x2e   :  { %684 = vmatpush3.bf16.msra.mxu0 %v683_v3 }
  0x2f   :  { %716 = vmatpush3.bf16.msra.mxu1 %v715_v6  ;;  %717 = vmatprep.subr.bf16.mxu0 %v756_v34 }
  0xe4   :  { %v140_v19 = vpop.f32.mrb[0].mxu0 }
  0xe5   :  { %v141_v20 = vadd.f32 %v140_v19, %v53_v15  ;;  %v211_v21 = vpop.f32.mrb[0].mxu1  ;;  %v142_v22 = vpop.f32.mrb[1].mxu0 }
  0xe6   :  { %v212_v23 = vadd.f32 %v211_v21, %v61_v16  ;;  %v143_v24 = vadd.f32 %v142_v22, %v57_v17  ;;  %v213_v25 = vpop.f32.mrb[1].mxu1 }
  0xe7   :  { %v214_v26 = vadd.f32 %v213_v25, %v65_v18  ;;  %v216_v29 = vmax.f32 %v141_v20, 0.0 }
  0xe8   :  { %v218_v27 = vmax.f32 %v212_v23, 0.0  ;;  %v217_v28 = vmax.f32 %v143_v24, 0.0 }
  0xe9   :  { %v219_v30 = vmax.f32 %v214_v26, 0.0 }
  0xea   :  { %352 = vmatprep.mubr.f32.mxu0 %v217_v28 }
  0xeb   :  { %422 = vmatprep.mubr.f32.mxu1 %v219_v30  ;;  %353 = vmatmul.mubr.f32.vlgmr.msra.gmra.mrb[2].mxu0 %v216_v29 }
  0xec   :  { %423 = vmatmul.mubr.f32.vlgmr.msra.gmra.mrb[2].mxu1 %v218_v27  ;;  %719 = vmatpush3.bf16.msra.mxu0 %v718_v33 }
  0xed   :  { %720 = vmatprep.subr.bf16.mxu0 %v756_v34  ;;  %626 = vmatprep.mubr.msk.f32.mxu0 %vm757_vm1, %v755_v7 }
  0xf0   :  { %722 = vmatpush3.bf16.msra.mxu0 %v721_v37 }
 0x1be   :  { %v575_v38 = vpop.f32.mrb[2].mxu0 }
 0x1bf   :  { %v610_v39 = vpop.f32.mrb[2].mxu1  ;;  %v576_v41 = vpop.f32.mrb[3].mxu0 }
 0x1c0   :  { %v577_v42 = vadd.f32 %v576_v41, %v575_v38  ;;  %v611_v43 = vpop.f32.mrb[3].mxu1 }
 0x1c1   :  { %v612_v44 = vadd.f32 %v611_v43, %v610_v39 }
 0x1c2   :  { %v355_v45 = vadd.f32 %v577_v42, %v540_v40 }
 0x1c4   :  { %v425_v46 = vadd.f32 %v612_v44, %v355_v45 }
 0x1c6   :  { %v428_v47 = vmax.f32 %v425_v46, 0.0 }
 0x1c8   :  { %627 = vmatmul.mubr.msk.f32.vlgmr.msra.gmra.mrb[4].mxu0 %vm437_vm2, %v428_v47 }
 0x29b   :  { %v507_v7 = vpop.f32.mrb[4].mxu0 }
 0x29c   :  { %v508_v49 = vadd.f32 %v541_v48, %v507_v7  ;;  %v628_v50 = vpop.f32.mrb[5].mxu0 }
 0x29e   :  { %v512_v51 = vsel %vm511_vm3, %v508_v49, -inf }
 0x29f   :  { %513 = vmax.xlane.f32.xlu0 %v512_v51 }
 0x32c   :  { %v514_v52 = vpop.xlane.xlu0 %513 }
 0x32d   :  { %v515_v53 = vsub.f32 %v508_v49, %v514_v52 }
 0x32f   :  { %v516_v54 = vmul.f32 1.442695, %v515_v53 }
 0x331   :  { %727 = vpow2.f32 %v516_v54 }
 0x33b   :  { %v728_v55 = vpop.eup %727 }
 0x33c   :  { %v518_v56 = vsel %vm511_vm3, %v728_v55, 0.0 }
 0x33d   :  { %519 = vadd.xlane.f32.xlu0 %v518_v56 }
 0x3ca   :  { %v520_v57 = vpop.xlane.xlu0 %519 }
 0x3cb   :  { %729 = vrcp.f32 %v520_v57 }
 0x3d5   :  { %v730_v58 = vpop.eup %729 }
 0x3d6   :  { %v522_v59 = vmul.f32 %v730_v58, %v728_v55 }
 0x3d8   :  { %523 = vst.msk [vmem:[#allocation2] sm:$0xff] %vm511_vm3, %v522_v59 }
 0x3d9   :  { %742 = shalt.err (!%p739_p4)
}
 0x3da   :  { %s743_s26 = scalar_lea.hbm %s1102_s5, 128 }
 0x3db   :  { %p744_p5 = scmp.ne.s32.totalorder %s1102_s5, %s743_s26  ;;  %p747_p6 = scmp.lt.u32.totalorder %s743_s26, %s1102_s5 }
 0x3dd   :  { %p749_p7 = pnand %p747_p6, %p744_p5 }
 0x3df   :  { %752 = shalt.err (!%p749_p7)
}
 0x3e0   :  { %533 = dma.vmem_to_hbm [thread:$0]  %s531_s23, 128, %s1102_s5, [#allocation3]  }
 0x3e1   :  { %753 = dma.done.wait [#allocation3], 128  }
 0x3e2   :  { %754 = vsyncadd [#allocation3], 4294967168 }
 0x3e3   :  { %537 = vsyncpa [#allocation3], 1 }

</bundles_post_ra>
